<compile_context>
chip_gen: v5e
topology: v5e:2x2
jax: 0.10.0
libtpu: 0.0.40
codegen_flags: <defaults>
</compile_context>

<pallas_src>
import jax
import jax.numpy as jnp
from jax import lax
from jax.experimental import pallas as pl
from jax.experimental.pallas import tpu as pltpu

_LANES = 128
_SUBLANES = 8


def _round_up(x, m):
    return ((x + m - 1) // m) * m


def _pad_to(a, rows=None, cols=None):
    pads = [(0, 0)] * a.ndim
    if rows is not None:
        pads[0] = (0, rows - a.shape[0])
    if cols is not None:
        pads[-1] = (0, cols - a.shape[-1])
    return jnp.pad(a, pads)


def _pick_batch_tile(B, tile_b):
    """Batch tile (multiple of 128) and padded batch size (multiple of the tile)."""
    bp = _round_up(B, _LANES)
    tb = min(_round_up(tile_b, _LANES), bp)
    if bp > _LANES:
        # v7x megacore: prefer >= 2 batch tiles so the "parallel" axis splits over 2 TCs.
        tb = min(tb, _round_up((bp + 1) // 2, _LANES))
    tb = max(tb, _LANES)
    b_pad = _round_up(bp, tb)
    return tb, b_pad


def _mlp_fused_kernel(uid_ref, iid_ref, au_ref, ai_ref, wo_ref, bo_ref, out_ref):
    # uid_ref/iid_ref: (TB, 1) int32 user / item ids for this batch tile  (pipelined)
    # au_ref: (Up, Hp)  user_emb @ Wh_user + bh, zero-padded              (VMEM-resident)
    # ai_ref: (Ip, Hp)  item_emb @ Wh_item,      zero-padded              (VMEM-resident)
    # wo_ref: (Hp, 128) output weight in column 0, zeros elsewhere        (VMEM-resident)
    # bo_ref: (1, 1)    output bias                                       (SMEM scalar)
    # out_ref: (TB, 1)  sigmoid output for this batch tile
    tb = uid_ref.shape[0]
    up = au_ref.shape[0]
    ip = ai_ref.shape[0]
    cdt = au_ref.dtype

    # Fused embedding gather + layer 1: exact one-hot row selection on the MXU.
    iota_u = lax.broadcasted_iota(jnp.int32, (tb, up), 1)
    iota_i = lax.broadcasted_iota(jnp.int32, (tb, ip), 1)
    u_oh = jnp.where(uid_ref[...] == iota_u, 1.0, 0.0).astype(cdt)      # (TB, Up)
    i_oh = jnp.where(iid_ref[...] == iota_i, 1.0, 0.0).astype(cdt)      # (TB, Ip)
    h = (jnp.dot(u_oh, au_ref[...], preferred_element_type=jnp.float32)
         + jnp.dot(i_oh, ai_ref[...], preferred_element_type=jnp.float32))  # (TB, Hp) f32

    # sigmoid via a single tanh EUP push (== 1/(1+exp(-h))).
    s = 0.5 * jnp.tanh(0.5 * h) + 0.5                                    # (TB, Hp)

    # Layer 2 on the MXU; zero-padded wo rows cancel sigmoid(0)=0.5 of padded columns.
    od = jnp.dot(s, wo_ref[...], preferred_element_type=jnp.float32)     # (TB, 128)
    o = od[:, :1] + bo_ref[0, 0]                                         # (TB, 1)
    out_ref[...] = 0.5 * jnp.tanh(0.5 * o) + 0.5


def _mlp_stream_kernel(x_ref, wh_ref, bh_ref, wo_ref, bo_ref, out_ref):
    # x_ref:  (TB, 2F)  gathered + concatenated embeddings (pipelined, f32 or bf16)
    # wh_ref: (2F, Hp)  hidden weight, zero-padded          (VMEM-resident)
    # bh_ref: (1, Hp)   hidden bias, zero-padded            (VMEM-resident)
    # wo_ref: (Hp, 128) output weight in column 0           (VMEM-resident)
    # bo_ref: (1, 1)    output bias                         (SMEM scalar)
    h = (jnp.dot(x_ref[...], wh_ref[...], preferred_element_type=jnp.float32)
         + bh_ref[...])                                                  # (TB, Hp) f32
    s = 0.5 * jnp.tanh(0.5 * h) + 0.5
    od = jnp.dot(s, wo_ref[...], preferred_element_type=jnp.float32)     # (TB, 128)
    o = od[:, :1] + bo_ref[0, 0]
    out_ref[...] = 0.5 * jnp.tanh(0.5 * o) + 0.5


def mlp_forward(user, item, params, *, tile_b=2048, matmul_dtype=jnp.float32,
                max_fused_table_bytes=8 * 1024 * 1024):
    """Full MLP forward (eval mode). user, item: int (B,). Returns float32 (B,)."""
    user_emb = params["user_emb"]            # (n_users, F)
    item_emb = params["item_emb"]            # (n_items, F)
    wh, bh = params["wh"], params["bh"]      # (2F, 2F), (2F,)
    wo, bo = params["wo"], params["bo"]      # (2F, 1), (1,)

    F = user_emb.shape[1]
    twoF = 2 * F
    Hp = _round_up(twoF, _LANES)             # hidden dim padded to lane width

    B = user.shape[0]
    TB, B_pad = _pick_batch_tile(B, tile_b)
    G = B_pad // TB

    # Padded batch rows use id 0 and are sliced off at the end (wasted-but-correct work).
    user_p = jnp.pad(user.astype(jnp.int32), (0, B_pad - B))
    item_p = jnp.pad(item.astype(jnp.int32), (0, B_pad - B))

    # Shared small operands.
    bo_s = bo.reshape(1, 1).astype(jnp.float32)                         # SMEM scalar
    wo_p = _pad_to(wo.astype(jnp.float32), rows=Hp, cols=_LANES)        # (Hp, 128), col 0

    out_shape = jax.ShapeDtypeStruct((B_pad, 1), jnp.float32)
    out_spec = pl.BlockSpec((TB, 1), lambda g: (g, 0))
    compiler_params = pltpu.CompilerParams(
        dimension_semantics=("parallel",),           # shard batch tiles over TCs (v7x)
        vmem_limit_bytes=32 * 1024 * 1024,           # explicit; safe on v5e/v6e/v7x
    )

    n_users, n_items = user_emb.shape[0], item_emb.shape[0]
    Up = _round_up(n_users, _SUBLANES)
    Ip = _round_up(n_items, _SUBLANES)
    fused_bytes = (Up + Ip) * Hp * jnp.dtype(matmul_dtype).itemsize

    if fused_bytes <= max_fused_table_bytes:
        # --- fused-gather path: fold layer 1 into the tables, gather in-kernel -------
        # Exact: the one-hot matmul selects one precomputed row per batch row.
        au = user_emb.astype(jnp.float32) @ wh[:F, :] + bh[None, :]     # (n_users, 2F)
        ai = item_emb.astype(jnp.float32) @ wh[F:, :]                   # (n_items, 2F)
        au = _pad_to(au, rows=Up, cols=Hp).astype(matmul_dtype)         # (Up, Hp)
        ai = _pad_to(ai, rows=Ip, cols=Hp).astype(matmul_dtype)         # (Ip, Hp)
        uid = user_p.reshape(B_pad, 1)
        iid = item_p.reshape(B_pad, 1)

        out = pl.pallas_call(
            _mlp_fused_kernel,
            out_shape=out_shape,
            grid=(G,),
            in_specs=[
                pl.BlockSpec((TB, 1), lambda g: (g, 0)),                # uid tile (pipelined)
                pl.BlockSpec((TB, 1), lambda g: (g, 0)),                # iid tile (pipelined)
                pl.BlockSpec((Up, Hp), lambda g: (0, 0)),               # folded user table
                pl.BlockSpec((Ip, Hp), lambda g: (0, 0)),               # folded item table
                pl.BlockSpec((Hp, _LANES), lambda g: (0, 0)),           # wo slab (resident)
                pl.BlockSpec(memory_space=pltpu.MemorySpace.SMEM),      # bo scalar
            ],
            out_specs=out_spec,
            compiler_params=compiler_params,
        )(uid, iid, au, ai, wo_p, bo_s)
    else:
        # --- streaming fallback: gather stays in XLA, stream pre-concatenated x ------
        # Single (TB,2F)@(2F,Hp) dot; cast x to matmul_dtype (bf16 halves the DMA).
        u = jnp.take(user_emb, user_p, axis=0)
        i = jnp.take(item_emb, item_p, axis=0)
        x = jnp.concatenate([u, i], axis=1).astype(matmul_dtype)        # (B_pad, 2F)
        wh_p = _pad_to(wh, cols=Hp).astype(matmul_dtype)                # (2F, Hp)
        bh_r = _pad_to(bh.reshape(1, twoF), cols=Hp)                    # (1, Hp) f32

        out = pl.pallas_call(
            _mlp_stream_kernel,
            out_shape=out_shape,
            grid=(G,),
            in_specs=[
                pl.BlockSpec((TB, twoF), lambda g: (g, 0)),             # x tile (pipelined)
                pl.BlockSpec((twoF, Hp), lambda g: (0, 0)),             # Wh (resident)
                pl.BlockSpec((1, Hp), lambda g: (0, 0)),                # bh (resident)
                pl.BlockSpec((Hp, _LANES), lambda g: (0, 0)),           # wo slab (resident)
                pl.BlockSpec(memory_space=pltpu.MemorySpace.SMEM),      # bo scalar
            ],
            out_specs=out_spec,
            compiler_params=compiler_params,
        )(x, wh_p, bh_r, wo_p, bo_s)

    return out.reshape(-1)[:B]


def init_params(key, n_users, n_items, n_factors):
    k = jax.random.split(key, 6)
    twoF = 2 * n_factors
    lim = 1.0 / float(twoF) ** 0.5
    return {
        "user_emb": jax.random.normal(k[0], (n_users, n_factors), jnp.float32),
        "item_emb": jax.random.normal(k[1], (n_items, n_factors), jnp.float32),
        "wh": jax.random.uniform(k[2], (twoF, twoF), jnp.float32, -lim, lim),
        "bh": jax.random.uniform(k[3], (twoF,), jnp.float32, -lim, lim),
        "wo": jax.random.uniform(k[4], (twoF, 1), jnp.float32, -lim, lim),
        "bo": jax.random.uniform(k[5], (1,), jnp.float32, -lim, lim),
    }


if __name__ == "__main__":
    n_users, n_items, n_factors = 10, 12, 16
    batch = 8

    key = jax.random.PRNGKey(0)
    pkey, ukey, ikey = jax.random.split(key, 3)
    params = init_params(pkey, n_users, n_items, n_factors)

    user = jax.random.randint(ukey, (batch,), 0, n_users, dtype=jnp.int32)
    item = jax.random.randint(ikey, (batch,), 0, n_items, dtype=jnp.int32)

    # Pure-JAX reference of the forward (eval mode: dropouts are identity).
    u = jnp.take(params["user_emb"], user, axis=0)
    i = jnp.take(params["item_emb"], item, axis=0)
    x = jnp.concatenate([u, i], axis=1)
    h = jax.nn.sigmoid(x @ params["wh"] + params["bh"])
    ref = jax.nn.sigmoid((h @ params["wo"] + params["bo"]).reshape(-1))

    # Default path: fused in-kernel gather (tables are tiny here).
    out_fused = jax.block_until_ready(mlp_forward(user, item, params))
    # Forced streaming fallback path (large-table code path), exercised for coverage.
    out_stream = jax.block_until_ready(
        mlp_forward(user, item, params, max_fused_table_bytes=0))

    assert out_fused.shape == (batch,) and out_stream.shape == (batch,)
    # 2e-3 headroom: MXU f32 matmuls may run as bf16 passes under default precision.
    assert jnp.allclose(out_fused, ref, atol=2e-3, rtol=2e-3), (out_fused, ref)
    assert jnp.allclose(out_stream, ref, atol=2e-3, rtol=2e-3), (out_stream, ref)

    print("KERNEL_OK")
</pallas_src>

<mosaic_0001>
module attributes {stable_mosaic.version = 11 : i64} {
  func.func @_mlp_fused_kernel(%arg0: i32, %arg1: memref<128x1xi32, #tpu.memory_space<vmem>>, %arg2: memref<128x1xi32, #tpu.memory_space<vmem>>, %arg3: memref<16x128xf32, #tpu.memory_space<vmem>>, %arg4: memref<16x128xf32, #tpu.memory_space<vmem>>, %arg5: memref<128x128xf32, #tpu.memory_space<vmem>>, %arg6: memref<1x1xf32, #tpu.memory_space<smem>>, %arg7: memref<128x1xf32, #tpu.memory_space<vmem>>) attributes {dimension_semantics = [#tpu.dimension_semantics<parallel>], iteration_bounds = array<i64: 1>, scalar_prefetch = 0 : i64, scratch_operands = 0 : i64, tpu.core_type = #tpu.core_type<tc>, window_params = [{transform_indices = @transform_0, window_bounds = array<i64: 128, 1>}, {transform_indices = @transform_1, window_bounds = array<i64: 128, 1>}, {pipeline_mode = #tpu.pipeline_mode<synchronous>, transform_indices = @transform_2, window_bounds = array<i64: 16, 128>}, {pipeline_mode = #tpu.pipeline_mode<synchronous>, transform_indices = @transform_3, window_bounds = array<i64: 16, 128>}, {pipeline_mode = #tpu.pipeline_mode<synchronous>, transform_indices = @transform_4, window_bounds = array<i64: 128, 128>}, {transform_indices = @transform_5, window_bounds = array<i64: 1, 1>}, {transform_indices = @transform_6, window_bounds = array<i64: 128, 1>}]} {
    %0 = tpu.iota {dimensions = array<i32: 1>} : vector<128x16xi32>
    %1 = tpu.iota {dimensions = array<i32: 1>} : vector<128x16xi32>
    %c0 = arith.constant 0 : index
    %c0_0 = arith.constant 0 : index
    %2 = vector.load %arg1[%c0, %c0_0] : memref<128x1xi32, #tpu.memory_space<vmem>>, vector<128x1xi32>
    %3 = vector.broadcast %2 : vector<128x1xi32> to vector<128x16xi32>
    %4 = arith.cmpi eq, %3, %0 : vector<128x16xi32>
    %cst = arith.constant 1.000000e+00 : f32
    %cst_1 = arith.constant 0.000000e+00 : f32
    %5 = vector.broadcast %cst : f32 to vector<128x16xf32>
    %6 = vector.broadcast %cst_1 : f32 to vector<128x16xf32>
    %7 = arith.select %4, %5, %6 : vector<128x16xi1>, vector<128x16xf32>
    %c0_2 = arith.constant 0 : index
    %c0_3 = arith.constant 0 : index
    %8 = vector.load %arg2[%c0_2, %c0_3] : memref<128x1xi32, #tpu.memory_space<vmem>>, vector<128x1xi32>
    %9 = vector.broadcast %8 : vector<128x1xi32> to vector<128x16xi32>
    %10 = arith.cmpi eq, %9, %1 : vector<128x16xi32>
    %cst_4 = arith.constant 1.000000e+00 : f32
    %cst_5 = arith.constant 0.000000e+00 : f32
    %11 = vector.broadcast %cst_4 : f32 to vector<128x16xf32>
    %12 = vector.broadcast %cst_5 : f32 to vector<128x16xf32>
    %13 = arith.select %10, %11, %12 : vector<128x16xi1>, vector<128x16xf32>
    %c0_6 = arith.constant 0 : index
    %c0_7 = arith.constant 0 : index
    %14 = vector.load %arg3[%c0_6, %c0_7] : memref<16x128xf32, #tpu.memory_space<vmem>>, vector<16x128xf32>
    %cst_8 = arith.constant dense<0.000000e+00> : vector<128x128xf32>
    %15 = tpu.matmul %7, %14, %cst_8 {dimension_numbers = #tpu.dot_dimension_numbers<[1], [0], [0], [1], [0, 0, 1, 1], [], []>} : vector<128x16xf32>, vector<16x128xf32>, vector<128x128xf32> -> vector<128x128xf32>
    %c0_9 = arith.constant 0 : index
    %c0_10 = arith.constant 0 : index
    %16 = vector.load %arg4[%c0_9, %c0_10] : memref<16x128xf32, #tpu.memory_space<vmem>>, vector<16x128xf32>
    %cst_11 = arith.constant dense<0.000000e+00> : vector<128x128xf32>
    %17 = tpu.matmul %13, %16, %cst_11 {dimension_numbers = #tpu.dot_dimension_numbers<[1], [0], [0], [1], [0, 0, 1, 1], [], []>} : vector<128x16xf32>, vector<16x128xf32>, vector<128x128xf32> -> vector<128x128xf32>
    %18 = arith.addf %15, %17 : vector<128x128xf32>
    %cst_12 = arith.constant 5.000000e-01 : f32
    %19 = vector.broadcast %cst_12 : f32 to vector<128x128xf32>
    %20 = arith.mulf %19, %18 : vector<128x128xf32>
    %21 = math.tanh %20 : vector<128x128xf32>
    %cst_13 = arith.constant 5.000000e-01 : f32
    %22 = vector.broadcast %cst_13 : f32 to vector<128x128xf32>
    %23 = arith.mulf %22, %21 : vector<128x128xf32>
    %cst_14 = arith.constant 5.000000e-01 : f32
    %24 = vector.broadcast %cst_14 : f32 to vector<128x128xf32>
    %25 = arith.addf %23, %24 : vector<128x128xf32>
    %c0_15 = arith.constant 0 : index
    %c0_16 = arith.constant 0 : index
    %26 = vector.load %arg5[%c0_15, %c0_16] : memref<128x128xf32, #tpu.memory_space<vmem>>, vector<128x128xf32>
    %cst_17 = arith.constant dense<0.000000e+00> : vector<128x128xf32>
    %27 = tpu.matmul %25, %26, %cst_17 {dimension_numbers = #tpu.dot_dimension_numbers<[1], [0], [0], [1], [0, 0, 1, 1], [], []>} : vector<128x128xf32>, vector<128x128xf32>, vector<128x128xf32> -> vector<128x128xf32>
    %28 = vector.extract_strided_slice %27 {offsets = [0, 0], sizes = [128, 1], strides = [1, 1]} : vector<128x128xf32> to vector<128x1xf32>
    %c0_18 = arith.constant 0 : index
    %c0_19 = arith.constant 0 : index
    %29 = memref.load %arg6[%c0_18, %c0_19] : memref<1x1xf32, #tpu.memory_space<smem>>
    %30 = vector.broadcast %29 : f32 to vector<128x1xf32>
    %31 = arith.addf %28, %30 : vector<128x1xf32>
    %cst_20 = arith.constant 5.000000e-01 : f32
    %32 = vector.broadcast %cst_20 : f32 to vector<128x1xf32>
    %33 = arith.mulf %32, %31 : vector<128x1xf32>
    %34 = math.tanh %33 : vector<128x1xf32>
    %cst_21 = arith.constant 5.000000e-01 : f32
    %35 = vector.broadcast %cst_21 : f32 to vector<128x1xf32>
    %36 = arith.mulf %35, %34 : vector<128x1xf32>
    %cst_22 = arith.constant 5.000000e-01 : f32
    %37 = vector.broadcast %cst_22 : f32 to vector<128x1xf32>
    %38 = arith.addf %36, %37 : vector<128x1xf32>
    %c0_23 = arith.constant 0 : index
    %c0_24 = arith.constant 0 : index
    %39 = vector.load %arg7[%c0_23, %c0_24] : memref<128x1xf32, #tpu.memory_space<vmem>>, vector<128x1xf32>
    tpu.vector_store %arg7[%c0_23, %c0_24], %38 {strides = array<i32>} : memref<128x1xf32, #tpu.memory_space<vmem>>, vector<128x1xf32>,
    return
  }
  func.func @transform_0(%arg0: i32) -> (i32, i32) {
    %c0_i32 = arith.constant 0 : i32
    %c0_i32_0 = arith.constant 0 : i32
    return %arg0, %c0_i32 : i32, i32
  }
  func.func @transform_1(%arg0: i32) -> (i32, i32) {
    %c0_i32 = arith.constant 0 : i32
    %c0_i32_0 = arith.constant 0 : i32
    return %arg0, %c0_i32 : i32, i32
  }
  func.func @transform_2(%arg0: i32) -> (i32, i32) {
    %c0_i32 = arith.constant 0 : i32
    %c0_i32_0 = arith.constant 0 : i32
    %c0_i32_1 = arith.constant 0 : i32
    return %c0_i32, %c0_i32_0 : i32, i32
  }
  func.func @transform_3(%arg0: i32) -> (i32, i32) {
    %c0_i32 = arith.constant 0 : i32
    %c0_i32_0 = arith.constant 0 : i32
    %c0_i32_1 = arith.constant 0 : i32
    return %c0_i32, %c0_i32_0 : i32, i32
  }
  func.func @transform_4(%arg0: i32) -> (i32, i32) {
    %c0_i32 = arith.constant 0 : i32
    %c0_i32_0 = arith.constant 0 : i32
    %c0_i32_1 = arith.constant 0 : i32
    return %c0_i32, %c0_i32_0 : i32, i32
  }
  func.func @transform_5(%arg0: i32) -> (i32, i32) {
    %c0_i32 = arith.constant 0 : i32
    %c0_i32_0 = arith.constant 0 : i32
    %c0_i32_1 = arith.constant 0 : i32
    return %c0_i32, %c0_i32_0 : i32, i32
  }
  func.func @transform_6(%arg0: i32) -> (i32, i32) {
    %c0_i32 = arith.constant 0 : i32
    %c0_i32_0 = arith.constant 0 : i32
    return %arg0, %c0_i32 : i32, i32
  }
}

</mosaic_0001>

<bundles_post_ra>
// kernel: tpu_custom_call.1
= control target key start
LH: loop header
LB: loop body
LE: loop exit
PB: predicated region body
PF: predicated region fallthrough
CT: control target
= control target key end

     0   :  { %v814_v0 = vmov 0   ;;  %v24_v37 = vlaneseq  ;;  %vm222_vm0 = vcmask 130048   ;;  %v815_v41 = vmov 0.0   ;;  %s1190_s0 = inlined_call_operand.vmem [shape: s32[128,1], index: 0, kind: input, shape index: {}]   ;;  %s1191_s1 = inlined_call_operand.vmem [shape: s32[128,1], index: 1, kind: input, shape index: {}]   ;;  %s1192_s2 = inlined_call_operand.vmem [shape: f32[16,128], index: 2, kind: input, shape index: {}]   ;;  %s1193_s3 = inlined_call_operand.vmem [shape: f32[16,128], index: 3, kind: input, shape index: {}]   ;;  %s1194_s4 = inlined_call_operand.vmem [shape: f32[128,128], index: 4, kind: input, shape index: {}]   ;;  %s1195_s5 = inlined_call_operand.<no memory space> [shape: f32[1,1], index: 5, kind: input, shape index: {}]   ;;  %s1196_s6 = inlined_call_operand.vmem [shape: f32[128,1], index: 6, kind: output, shape index: {}]  }
   0x1   :  { %749 = vset.pattern.permute.xlu2 %v814_v0  ;;  %748 = vset.pattern.permute.xlu1 %v814_v0  ;;  %v28_v1 = vld [vmem:[%s1190_s0 + $0x10] sm:$0xff]  ;;  %v27_v2 = vld [vmem:[%s1190_s0 + $0x8] sm:$0xff]  ;;  %v26_v3 = vld [vmem:[%s1190_s0] sm:$0xff] }
   0x2   :  { %747 = vset.pattern.permute.xlu0 %v814_v0  ;;  %49 = vperm.xlu2 %749, %v28_v1   ;;  %v124_v4 = vld [vmem:[%s1191_s1 + $0x10] sm:$0xff]  ;;  %v123_v5 = vld [vmem:[%s1191_s1 + $0x8] sm:$0xff]  ;;  %v122_v6 = vld [vmem:[%s1191_s1] sm:$0xff]  ;;  %v959_v38 = vand.u32 127, %v24_v37 }
   0x3   :  { %46 = vperm.xlu1 %748, %v27_v2   ;;  %43 = vperm.xlu0 %747, %v26_v3   ;;  %v30_v7 = vld [vmem:[%s1190_s0 + $0x20] sm:$0xff]  ;;  %v125_v8 = vld [vmem:[%s1191_s1 + $0x18] sm:$0xff]  ;;  %v127_v10 = vld [vmem:[%s1191_s1 + $0x28] sm:$0xff] }
   0x4   :  { %v29_v9 = vld [vmem:[%s1190_s0 + $0x18] sm:$0xff]  ;;  %v31_v11 = vld [vmem:[%s1190_s0 + $0x28] sm:$0xff]  ;;  %v126_v12 = vld [vmem:[%s1191_s1 + $0x20] sm:$0xff] }
   0x5   :  { %v33_v13 = vld [vmem:[%s1190_s0 + $0x38] sm:$0xff]  ;;  %v128_v14 = vld [vmem:[%s1191_s1 + $0x30] sm:$0xff]  ;;  %v130_v16 = vld [vmem:[%s1191_s1 + $0x40] sm:$0xff] }
   0x6   :  { %v32_v15 = vld [vmem:[%s1190_s0 + $0x30] sm:$0xff]  ;;  %v34_v17 = vld [vmem:[%s1190_s0 + $0x40] sm:$0xff]  ;;  %v129_v18 = vld [vmem:[%s1191_s1 + $0x38] sm:$0xff] }
   0x7   :  { %v36_v19 = vld [vmem:[%s1190_s0 + $0x50] sm:$0xff]  ;;  %v131_v20 = vld [vmem:[%s1191_s1 + $0x48] sm:$0xff]  ;;  %v133_v22 = vld [vmem:[%s1191_s1 + $0x58] sm:$0xff] }
   0x8   :  { %v35_v21 = vld [vmem:[%s1190_s0 + $0x48] sm:$0xff]  ;;  %v37_v23 = vld [vmem:[%s1190_s0 + $0x58] sm:$0xff]  ;;  %v132_v24 = vld [vmem:[%s1191_s1 + $0x50] sm:$0xff] }
   0x9   :  { %v39_v25 = vld [vmem:[%s1190_s0 + $0x68] sm:$0xff]  ;;  %v134_v26 = vld [vmem:[%s1191_s1 + $0x60] sm:$0xff]  ;;  %v136_v28 = vld [vmem:[%s1191_s1 + $0x70] sm:$0xff] }
   0xa   :  { %145 = vperm.xlu2 %749, %v124_v4   ;;  %v38_v27 = vld [vmem:[%s1190_s0 + $0x60] sm:$0xff]  ;;  %v40_v29 = vld [vmem:[%s1190_s0 + $0x70] sm:$0xff]  ;;  %v135_v30 = vld [vmem:[%s1191_s1 + $0x68] sm:$0xff] }
   0xb   :  { %142 = vperm.xlu1 %748, %v123_v5   ;;  %139 = vperm.xlu0 %747, %v122_v6   ;;  %v219_v31 = vld [vmem:[%s1192_s2 + $0x8] sm:$0xff]  ;;  %v137_v32 = vld [vmem:[%s1191_s1 + $0x78] sm:$0xff]  ;;  %v218_v34 = vld [vmem:[%s1192_s2] sm:$0xff] }
   0xc   :  { %398 = vmatpush.msra.mxu1 %v219_v31  ;;  %v41_v33 = vld [vmem:[%s1190_s0 + $0x78] sm:$0xff]  ;;  %v221_v35 = vld [vmem:[%s1193_s3 + $0x8] sm:$0xff]  ;;  %v220_v36 = vld [vmem:[%s1193_s3] sm:$0xff] }
   0xd   :  { %285 = vmatpush.msra.mxu0 %v221_v35  ;;  %v521_v35 = vld [vmem:[%s1194_s4 + $0x40] sm:$0xff] }
   0xe   :  { %399 = vmatpush.msra.mxu1 %v218_v34 }
   0xf   :  { %286 = vmatpush.msra.mxu0 %v220_v36  ;;  %v520_v36 = vld [vmem:[%s1194_s4 + $0x38] sm:$0xff] }
  0x12   :  { %55 = vperm.xlu2 %749, %v30_v7  }
  0x13   :  { %148 = vperm.xlu1 %748, %v125_v8   ;;  %52 = vperm.xlu0 %747, %v29_v9  }
  0x1a   :  { %154 = vperm.xlu2 %749, %v127_v10  }
  0x1b   :  { %58 = vperm.xlu1 %748, %v31_v11   ;;  %151 = vperm.xlu0 %747, %v126_v12  }
  0x22   :  { %64 = vperm.xlu2 %749, %v33_v13  }
  0x23   :  { %157 = vperm.xlu1 %748, %v128_v14   ;;  %61 = vperm.xlu0 %747, %v32_v15  }
  0x2a   :  { %163 = vperm.xlu2 %749, %v130_v16  }
  0x2b   :  { %67 = vperm.xlu1 %748, %v34_v17   ;;  %160 = vperm.xlu0 %747, %v129_v18  }
  0x32   :  { %73 = vperm.xlu2 %749, %v36_v19   ;;  %v528_v19 = vld [vmem:[%s1194_s4 + $0x78] sm:$0xff] }
  0x33   :  { %166 = vperm.xlu1 %748, %v131_v20   ;;  %70 = vperm.xlu0 %747, %v35_v21  }
  0x34   :  { %529 = vmatpush.msra.mxu2 %v528_v19  ;;  %729 = vmatpush.msra.mxu3 %v528_v19 }
  0x3a   :  { %172 = vperm.xlu2 %749, %v133_v22  }
  0x3b   :  { %76 = vperm.xlu1 %748, %v37_v23   ;;  %169 = vperm.xlu0 %747, %v132_v24   ;;  %v527_v24 = vld [vmem:[%s1194_s4 + $0x70] sm:$0xff] }
  0x3c   :  { %530 = vmatpush.msra.mxu2 %v527_v24  ;;  %730 = vmatpush.msra.mxu3 %v527_v24 }
  0x42   :  { %82 = vperm.xlu2 %749, %v39_v25   ;;  %v526_v25 = vld [vmem:[%s1194_s4 + $0x68] sm:$0xff] }
  0x43   :  { %175 = vperm.xlu1 %748, %v134_v26   ;;  %79 = vperm.xlu0 %747, %v38_v27   ;;  %v525_v27 = vld [vmem:[%s1194_s4 + $0x60] sm:$0xff] }
  0x44   :  { %531 = vmatpush.msra.mxu2 %v526_v25  ;;  %731 = vmatpush.msra.mxu3 %v526_v25 }
  0x46   :  { %532 = vmatpush.msra.mxu2 %v525_v27  ;;  %732 = vmatpush.msra.mxu3 %v525_v27 }
  0x4a   :  { %181 = vperm.xlu2 %749, %v136_v28   ;;  %v524_v28 = vld [vmem:[%s1194_s4 + $0x58] sm:$0xff] }
  0x4b   :  { %85 = vperm.xlu1 %748, %v40_v29   ;;  %178 = vperm.xlu0 %747, %v135_v30  }
  0x4c   :  { %533 = vmatpush.msra.mxu2 %v524_v28  ;;  %733 = vmatpush.msra.mxu3 %v524_v28 }
  0x53   :  { %184 = vperm.xlu1 %748, %v137_v32   ;;  %88 = vperm.xlu0 %747, %v41_v33   ;;  %v523_v32 = vld [vmem:[%s1194_s4 + $0x50] sm:$0xff]  ;;  %v522_v33 = vld [vmem:[%s1194_s4 + $0x48] sm:$0xff] }
  0x54   :  { %534 = vmatpush.msra.mxu2 %v523_v32  ;;  %734 = vmatpush.msra.mxu3 %v523_v32 }
  0x56   :  { %535 = vmatpush.msra.mxu2 %v522_v33  ;;  %735 = vmatpush.msra.mxu3 %v522_v33 }
  0x58   :  { %536 = vmatpush.msra.mxu2 %v521_v35  ;;  %736 = vmatpush.msra.mxu3 %v521_v35 }
  0x5a   :  { %537 = vmatpush.msra.mxu2 %v520_v36  ;;  %737 = vmatpush.msra.mxu3 %v520_v36 }
  0x5c   :  { %v50_v45 = vpop.permute.xlu2 %49 }
  0x5d   :  { %vm92_vm4 = vcmp.eq.s32.totalorder %v50_v45, %v959_v38  ;;  %v517_v45 = vld [vmem:[%s1194_s4 + $0x20] sm:$0xff] }
  0x5e   :  { %v108_v48 = vsel %vm92_vm4, 1.0, %v815_v41 }
  0x64   :  { %v146_v50 = vpop.permute.xlu2 %145 }
  0x65   :  { %vm188_vm6 = vcmp.eq.s32.totalorder %v146_v50, %v959_v38 }
  0x66   :  { %v204_v52 = vsel %vm188_vm6, 1.0, %v815_v41 }
  0x6c   :  { %v56_v55 = vpop.permute.xlu2 %55 }
  0x6d   :  { %vm94_vm8 = vcmp.eq.s32.totalorder %v56_v55, %v959_v38 }
  0x6e   :  { %v110_v56 = vsel %vm94_vm8, 1.0, %v815_v41 }
  0x74   :  { %v155_v62 = vpop.permute.xlu2 %154 }
  0x75   :  { %v44_v39 = vpop.permute.xlu0 %43  ;;  %v47_v40 = vpop.permute.xlu1 %46  ;;  %vm191_vm12 = vcmp.eq.s32.totalorder %v155_v62, %v959_v38 }
  0x76   :  { %vm90_vm1 = vcmp.eq.s32.totalorder %v44_v39, %v959_v38  ;;  %vm91_vm2 = vcmp.eq.s32.totalorder %v47_v40, %v959_v38  ;;  %v207_v0 = vsel %vm191_vm12, 1.0, %v815_v41 }
  0x77   :  { %v106_v42 = vsel %vm90_vm1, 1.0, %v815_v41  ;;  %v107_v43 = vsel %vm91_vm2, 1.0, %v815_v41 }
  0x78   :  { %713 = vmatmul.msk.f32.vlgmr.msra.gmra.mxu1 %vm222_vm0, %v106_v42  ;;  %v519_v42 = vld [vmem:[%s1194_s4 + $0x30] sm:$0xff] }
  0x79   :  { %538 = vmatpush.msra.mxu2 %v519_v42  ;;  %738 = vmatpush.msra.mxu3 %v519_v42 }
  0x7c   :  { %v65_v3 = vpop.permute.xlu2 %64 }
  0x7d   :  { %v140_v44 = vpop.permute.xlu0 %139  ;;  %v143_v47 = vpop.permute.xlu1 %142  ;;  %vm97_vm14 = vcmp.eq.s32.totalorder %v65_v3, %v959_v38 }
  0x7e   :  { %vm186_vm3 = vcmp.eq.s32.totalorder %v140_v44, %v959_v38  ;;  %vm187_vm5 = vcmp.eq.s32.totalorder %v143_v47, %v959_v38  ;;  %v113_v4 = vsel %vm97_vm14, 1.0, %v815_v41  ;;  %v518_v44 = vld [vmem:[%s1194_s4 + $0x28] sm:$0xff] }
  0x7f   :  { %v202_v46 = vsel %vm186_vm3, 1.0, %v815_v41  ;;  %v203_v49 = vsel %vm187_vm5, 1.0, %v815_v41  ;;  %539 = vmatpush.msra.mxu2 %v518_v44  ;;  %739 = vmatpush.msra.mxu3 %v518_v44 }
  0x80   :  { %697 = vmatmul.msk.f32.vlgmr.msra.gmra.mxu0 %vm222_vm0, %v202_v46  ;;  %714 = vmatmul.msk.f32.gmra.mxu1 %vm222_vm0, %v107_v43  ;;  %v516_v46 = vld [vmem:[%s1194_s4 + $0x18] sm:$0xff] }
  0x81   :  { %540 = vmatpush.msra.mxu2 %v517_v45  ;;  %740 = vmatpush.msra.mxu3 %v517_v45 }
  0x83   :  { %541 = vmatpush.msra.mxu2 %v516_v46  ;;  %741 = vmatpush.msra.mxu3 %v516_v46 }
  0x84   :  { %v164_v8 = vpop.permute.xlu2 %163 }
  0x85   :  { %v53_v51 = vpop.permute.xlu0 %52  ;;  %v149_v53 = vpop.permute.xlu1 %148  ;;  %vm194_vm3 = vcmp.eq.s32.totalorder %v164_v8, %v959_v38 }
  0x86   :  { %vm93_vm7 = vcmp.eq.s32.totalorder %v53_v51, %v959_v38  ;;  %vm189_vm9 = vcmp.eq.s32.totalorder %v149_v53, %v959_v38  ;;  %v210_v12 = vsel %vm194_vm3, 1.0, %v815_v41  ;;  %v513_v53 = vld [vmem:[%s1194_s4] sm:$0xff] }
  0x87   :  { %v109_v54 = vsel %vm93_vm7, 1.0, %v815_v41  ;;  %v205_v57 = vsel %vm189_vm9, 1.0, %v815_v41 }
  0x88   :  { %698 = vmatmul.msk.f32.gmra.mxu0 %vm222_vm0, %v203_v49  ;;  %715 = vmatmul.msk.f32.gmra.mxu1 %vm222_vm0, %v108_v48  ;;  %v515_v49 = vld [vmem:[%s1194_s4 + $0x10] sm:$0xff] }
  0x89   :  { %542 = vmatpush.msra.mxu2 %v515_v49  ;;  %742 = vmatpush.msra.mxu3 %v515_v49 }
  0x8c   :  { %v74_v15 = vpop.permute.xlu2 %73 }
  0x8d   :  { %v152_v58 = vpop.permute.xlu0 %151  ;;  %v59_v59 = vpop.permute.xlu1 %58  ;;  %vm100_vm5 = vcmp.eq.s32.totalorder %v74_v15, %v959_v38 }
  0x8e   :  { %vm95_vm10 = vcmp.eq.s32.totalorder %v59_v59, %v959_v38  ;;  %vm190_vm11 = vcmp.eq.s32.totalorder %v152_v58, %v959_v38  ;;  %v116_v16 = vsel %vm100_vm5, 1.0, %v815_v41 }
  0x8f   :  { %v111_v60 = vsel %vm95_vm10, 1.0, %v815_v41  ;;  %v206_v61 = vsel %vm190_vm11, 1.0, %v815_v41 }
  0x90   :  { %699 = vmatmul.msk.f32.gmra.mxu0 %vm222_vm0, %v204_v52  ;;  %716 = vmatmul.msk.f32.gmra.mxu1 %vm222_vm0, %v109_v54  ;;  %v514_v52 = vld [vmem:[%s1194_s4 + $0x8] sm:$0xff] }
  0x91   :  { %543 = vmatpush.msra.mxu2 %v514_v52  ;;  %743 = vmatpush.msra.mxu3 %v514_v52 }
  0x93   :  { %544 = vmatpush.msra.mxu2 %v513_v53  ;;  %744 = vmatpush.msra.mxu3 %v513_v53 }
  0x94   :  { %v173_v21 = vpop.permute.xlu2 %172 }
  0x95   :  { %v62_v63 = vpop.permute.xlu0 %61  ;;  %v158_v1 = vpop.permute.xlu1 %157  ;;  %vm197_vm9 = vcmp.eq.s32.totalorder %v173_v21, %v959_v38 }
  0x96   :  { %vm96_vm13 = vcmp.eq.s32.totalorder %v62_v63, %v959_v38  ;;  %vm192_vm15 = vcmp.eq.s32.totalorder %v158_v1, %v959_v38  ;;  %v213_v29 = vsel %vm197_vm9, 1.0, %v815_v41 }
  0x97   :  { %v112_v2 = vsel %vm96_vm13, 1.0, %v815_v41  ;;  %v208_v5 = vsel %vm192_vm15, 1.0, %v815_v41 }
  0x98   :  { %700 = vmatmul.msk.f32.gmra.mxu0 %vm222_vm0, %v205_v57  ;;  %717 = vmatmul.msk.f32.gmra.mxu1 %vm222_vm0, %v110_v56 }
  0x9c   :  { %v83_v34 = vpop.permute.xlu2 %82 }
  0x9d   :  { %v161_v6 = vpop.permute.xlu0 %160  ;;  %v68_v7 = vpop.permute.xlu1 %67  ;;  %vm103_vm11 = vcmp.eq.s32.totalorder %v83_v34, %v959_v38 }
  0x9e   :  { %vm98_vm1 = vcmp.eq.s32.totalorder %v68_v7, %v959_v38  ;;  %vm193_vm2 = vcmp.eq.s32.totalorder %v161_v6, %v959_v38  ;;  %v119_v37 = vsel %vm103_vm11, 1.0, %v815_v41 }
  0x9f   :  { %v114_v9 = vsel %vm98_vm1, 1.0, %v815_v41  ;;  %v209_v10 = vsel %vm193_vm2, 1.0, %v815_v41 }
  0xa0   :  { %701 = vmatmul.msk.f32.gmra.mxu0 %vm222_vm0, %v206_v61  ;;  %718 = vmatmul.msk.f32.gmra.mxu1 %vm222_vm0, %v111_v60 }
  0xa4   :  { %v182_v50 = vpop.permute.xlu2 %181 }
  0xa5   :  { %v71_v11 = vpop.permute.xlu0 %70  ;;  %v167_v13 = vpop.permute.xlu1 %166  ;;  %vm200_vm15 = vcmp.eq.s32.totalorder %v182_v50, %v959_v38 }
  0xa6   :  { %vm99_vm4 = vcmp.eq.s32.totalorder %v71_v11, %v959_v38  ;;  %vm195_vm6 = vcmp.eq.s32.totalorder %v167_v13, %v959_v38  ;;  %v216_v54 = vsel %vm200_vm15, 1.0, %v815_v41 }
  0xa7   :  { %v115_v14 = vsel %vm99_vm4, 1.0, %v815_v41  ;;  %v211_v17 = vsel %vm195_vm6, 1.0, %v815_v41 }
  0xa8   :  { %702 = vmatmul.msk.f32.gmra.mxu0 %vm222_vm0, %v207_v0  ;;  %719 = vmatmul.msk.f32.gmra.mxu1 %vm222_vm0, %v112_v2 }
  0xad   :  { %v170_v18 = vpop.permute.xlu0 %169  ;;  %v77_v20 = vpop.permute.xlu1 %76 }
  0xae   :  { %vm101_vm7 = vcmp.eq.s32.totalorder %v77_v20, %v959_v38  ;;  %vm196_vm8 = vcmp.eq.s32.totalorder %v170_v18, %v959_v38 }
  0xaf   :  { %v117_v22 = vsel %vm101_vm7, 1.0, %v815_v41  ;;  %v212_v23 = vsel %vm196_vm8, 1.0, %v815_v41 }
  0xb0   :  { %703 = vmatmul.msk.f32.gmra.mxu0 %vm222_vm0, %v208_v5  ;;  %720 = vmatmul.msk.f32.gmra.mxu1 %vm222_vm0, %v113_v4 }
  0xb5   :  { %v80_v26 = vpop.permute.xlu0 %79  ;;  %v176_v30 = vpop.permute.xlu1 %175 }
  0xb6   :  { %vm102_vm10 = vcmp.eq.s32.totalorder %v80_v26, %v959_v38  ;;  %vm198_vm12 = vcmp.eq.s32.totalorder %v176_v30, %v959_v38 }
  0xb7   :  { %v118_v31 = vsel %vm102_vm10, 1.0, %v815_v41  ;;  %v214_v39 = vsel %vm198_vm12, 1.0, %v815_v41 }
  0xb8   :  { %704 = vmatmul.msk.f32.gmra.mxu0 %vm222_vm0, %v209_v10  ;;  %721 = vmatmul.msk.f32.gmra.mxu1 %vm222_vm0, %v114_v9 }
  0xbd   :  { %v179_v40 = vpop.permute.xlu0 %178  ;;  %v86_v43 = vpop.permute.xlu1 %85 }
  0xbe   :  { %vm104_vm13 = vcmp.eq.s32.totalorder %v86_v43, %v959_v38  ;;  %vm199_vm14 = vcmp.eq.s32.totalorder %v179_v40, %v959_v38 }
  0xbf   :  { %v120_v47 = vsel %vm104_vm13, 1.0, %v815_v41  ;;  %v215_v48 = vsel %vm199_vm14, 1.0, %v815_v41 }
  0xc0   :  { %705 = vmatmul.msk.f32.gmra.mxu0 %vm222_vm0, %v210_v12  ;;  %722 = vmatmul.msk.f32.gmra.mxu1 %vm222_vm0, %v115_v14 }
  0xc5   :  { %v89_v51 = vpop.permute.xlu0 %88  ;;  %v185_v56 = vpop.permute.xlu1 %184 }
  0xc6   :  { %vm105_vm1 = vcmp.eq.s32.totalorder %v89_v51, %v959_v38  ;;  %vm201_vm2 = vcmp.eq.s32.totalorder %v185_v56, %v959_v38 }
  0xc7   :  { %v121_v55 = vsel %vm105_vm1, 1.0, %v815_v41  ;;  %v217_v58 = vsel %vm201_vm2, 1.0, %v815_v41 }
  0xc8   :  { %706 = vmatmul.msk.f32.gmra.mxu0 %vm222_vm0, %v211_v17  ;;  %723 = vmatmul.msk.f32.gmra.mxu1 %vm222_vm0, %v116_v16 }
  0xd0   :  { %707 = vmatmul.msk.f32.gmra.mxu0 %vm222_vm0, %v212_v23  ;;  %724 = vmatmul.msk.f32.gmra.mxu1 %vm222_vm0, %v117_v22 }
  0xd8   :  { %708 = vmatmul.msk.f32.gmra.mxu0 %vm222_vm0, %v213_v29  ;;  %725 = vmatmul.msk.f32.gmra.mxu1 %vm222_vm0, %v118_v31 }
  0xe0   :  { %709 = vmatmul.msk.f32.gmra.mxu0 %vm222_vm0, %v214_v39  ;;  %726 = vmatmul.msk.f32.gmra.mxu1 %vm222_vm0, %v119_v37 }
  0xe8   :  { %710 = vmatmul.msk.f32.gmra.mxu0 %vm222_vm0, %v215_v48  ;;  %727 = vmatmul.msk.f32.gmra.mxu1 %vm222_vm0, %v120_v47 }
  0xf0   :  { %711 = vmatmul.msk.f32.gmra.mxu0 %vm222_vm0, %v216_v54  ;;  %728 = vmatmul.msk.f32.gmra.mxu1 %vm222_vm0, %v121_v55 }
  0xf5   :  { %v401_v57 = vpop.f32.mrf.mxu1 }
  0xf8   :  { %712 = vmatmul.msk.f32.gmra.mxu0 %vm222_vm0, %v217_v58  ;;  %vm676_vm0 = vcmask 7168  }
  0xfd   :  { %v288_v59 = vpop.f32.mrf.mxu0  ;;  %v404_v60 = vpop.f32.mrf.mxu1 }
  0xfe   :  { %v402_v61 = vadd.f32 %v401_v57, %v288_v59 }
 0x100   :  { %v449_v62 = vmul.f32 0.5, %v402_v61 }
 0x102   :  { %750 = vtanh.f32 %v449_v62 }
 0x105   :  { %v291_v63 = vpop.f32.mrf.mxu0  ;;  %v407_v0 = vpop.f32.mrf.mxu1 }
 0x106   :  { %v405_v1 = vadd.f32 %v404_v60, %v291_v63 }
 0x108   :  { %v751_v2 = vpop.eup %750  ;;  %v450_v3 = vmul.f32 0.5, %v405_v1 }
 0x109   :  { %v481_v4 = vmul.f32 0.5, %v751_v2 }
 0x10a   :  { %752 = vtanh.f32 %v450_v3 }
 0x10b   :  { %v497_v5 = vadd.f32 0.5, %v481_v4 }
 0x10d   :  { %v294_v6 = vpop.f32.mrf.mxu0  ;;  %v410_v38 = vpop.f32.mrf.mxu1  ;;  %545 = vmatmul.f32.vlgmr.msra.gmra.mxu2 %v497_v5 }
 0x10e   :  { %v408_v7 = vadd.f32 %v407_v0, %v294_v6 }
 0x110   :  { %v753_v41 = vpop.eup %752  ;;  %v451_v8 = vmul.f32 0.5, %v408_v7 }
 0x111   :  { %v482_v9 = vmul.f32 0.5, %v753_v41 }
 0x112   :  { %754 = vtanh.f32 %v451_v8 }
 0x113   :  { %v498_v10 = vadd.f32 0.5, %v482_v9 }
 0x115   :  { %v297_v11 = vpop.f32.mrf.mxu0  ;;  %v413_v12 = vpop.f32.mrf.mxu1  ;;  %548 = vmatmul.f32.gmra.mxu2 %v498_v10 }
 0x116   :  { %v411_v13 = vadd.f32 %v410_v38, %v297_v11 }
 0x118   :  { %v755_v14 = vpop.eup %754  ;;  %v452_v15 = vmul.f32 0.5, %v411_v13 }
 0x119   :  { %v483_v16 = vmul.f32 0.5, %v755_v14 }
 0x11a   :  { %756 = vtanh.f32 %v452_v15 }
 0x11b   :  { %v499_v17 = vadd.f32 0.5, %v483_v16 }
 0x11d   :  { %v300_v18 = vpop.f32.mrf.mxu0  ;;  %v416_v19 = vpop.f32.mrf.mxu1  ;;  %551 = vmatmul.f32.gmra.mxu2 %v499_v17 }
 0x11e   :  { %v414_v20 = vadd.f32 %v413_v12, %v300_v18 }
 0x120   :  { %v757_v21 = vpop.eup %756  ;;  %v453_v22 = vmul.f32 0.5, %v414_v20 }
 0x121   :  { %v484_v23 = vmul.f32 0.5, %v757_v21 }
 0x122   :  { %758 = vtanh.f32 %v453_v22 }
 0x123   :  { %v500_v24 = vadd.f32 0.5, %v484_v23 }
 0x125   :  { %v303_v25 = vpop.f32.mrf.mxu0  ;;  %v419_v26 = vpop.f32.mrf.mxu1  ;;  %554 = vmatmul.f32.gmra.mxu2 %v500_v24 }
 0x126   :  { %v417_v27 = vadd.f32 %v416_v19, %v303_v25 }
 0x128   :  { %v759_v28 = vpop.eup %758  ;;  %v454_v29 = vmul.f32 0.5, %v417_v27 }
 0x129   :  { %v485_v30 = vmul.f32 0.5, %v759_v28 }
 0x12a   :  { %760 = vtanh.f32 %v454_v29 }
 0x12b   :  { %v501_v31 = vadd.f32 0.5, %v485_v30 }
 0x12d   :  { %v306_v32 = vpop.f32.mrf.mxu0  ;;  %v422_v33 = vpop.f32.mrf.mxu1  ;;  %557 = vmatmul.f32.gmra.mxu2 %v501_v31 }
 0x12e   :  { %v420_v34 = vadd.f32 %v419_v26, %v306_v32 }
 0x130   :  { %v761_v35 = vpop.eup %760  ;;  %v455_v36 = vmul.f32 0.5, %v420_v34 }
 0x131   :  { %v486_v37 = vmul.f32 0.5, %v761_v35 }
 0x132   :  { %762 = vtanh.f32 %v455_v36 }
 0x133   :  { %v502_v39 = vadd.f32 0.5, %v486_v37 }
 0x135   :  { %v309_v40 = vpop.f32.mrf.mxu0  ;;  %v425_v42 = vpop.f32.mrf.mxu1  ;;  %560 = vmatmul.f32.gmra.mxu2 %v502_v39 }
 0x136   :  { %v423_v43 = vadd.f32 %v422_v33, %v309_v40 }
 0x138   :  { %v763_v44 = vpop.eup %762  ;;  %v456_v45 = vmul.f32 0.5, %v423_v43 }
 0x139   :  { %v487_v46 = vmul.f32 0.5, %v763_v44 }
 0x13a   :  { %764 = vtanh.f32 %v456_v45 }
 0x13b   :  { %v503_v47 = vadd.f32 0.5, %v487_v46 }
 0x13d   :  { %v312_v48 = vpop.f32.mrf.mxu0  ;;  %v428_v49 = vpop.f32.mrf.mxu1  ;;  %563 = vmatmul.f32.gmra.mxu2 %v503_v47 }
 0x13e   :  { %v426_v50 = vadd.f32 %v425_v42, %v312_v48  ;;  %v1108_v42 = vstv %s1195_s5 }
 0x140   :  { %v765_v51 = vpop.eup %764  ;;  %v457_v52 = vmul.f32 0.5, %v426_v50 }
 0x141   :  { %v488_v53 = vmul.f32 0.5, %v765_v51 }
 0x142   :  { %766 = vtanh.f32 %v457_v52 }
 0x143   :  { %v504_v54 = vadd.f32 0.5, %v488_v53 }
 0x145   :  { %v315_v55 = vpop.f32.mrf.mxu0  ;;  %v431_v56 = vpop.f32.mrf.mxu1  ;;  %566 = vmatmul.f32.gmra.mxu2 %v504_v54 }
 0x146   :  { %v429_v57 = vadd.f32 %v428_v49, %v315_v55 }
 0x148   :  { %v767_v58 = vpop.eup %766  ;;  %v458_v59 = vmul.f32 0.5, %v429_v57 }
 0x149   :  { %v489_v60 = vmul.f32 0.5, %v767_v58 }
 0x14a   :  { %768 = vtanh.f32 %v458_v59 }
 0x14b   :  { %v505_v61 = vadd.f32 0.5, %v489_v60 }
 0x14d   :  { %v318_v62 = vpop.f32.mrf.mxu0  ;;  %v434_v63 = vpop.f32.mrf.mxu1  ;;  %569 = vmatmul.f32.gmra.mxu2 %v505_v61 }
 0x14e   :  { %v432_v0 = vadd.f32 %v431_v56, %v318_v62 }
 0x150   :  { %v769_v1 = vpop.eup %768  ;;  %v459_v2 = vmul.f32 0.5, %v432_v0 }
 0x151   :  { %v490_v3 = vmul.f32 0.5, %v769_v1 }
 0x152   :  { %770 = vtanh.f32 %v459_v2 }
 0x153   :  { %v506_v4 = vadd.f32 0.5, %v490_v3 }
 0x155   :  { %v321_v5 = vpop.f32.mrf.mxu0  ;;  %572 = vmatmul.f32.gmra.mxu2 %v506_v4  ;;  %v437_v38 = vpop.f32.mrf.mxu1 }
 0x156   :  { %v435_v6 = vadd.f32 %v434_v63, %v321_v5 }
 0x158   :  { %v771_v7 = vpop.eup %770  ;;  %v460_v41 = vmul.f32 0.5, %v435_v6 }
 0x159   :  { %v491_v8 = vmul.f32 0.5, %v771_v7 }
 0x15a   :  { %772 = vtanh.f32 %v460_v41 }
 0x15b   :  { %v507_v9 = vadd.f32 0.5, %v491_v8 }
 0x15d   :  { %v324_v10 = vpop.f32.mrf.mxu0  ;;  %575 = vmatmul.f32.gmra.mxu2 %v507_v9  ;;  %v440_v14 = vpop.f32.mrf.mxu1 }
 0x15e   :  { %v438_v11 = vadd.f32 %v437_v38, %v324_v10 }
 0x160   :  { %v773_v12 = vpop.eup %772  ;;  %v461_v13 = vmul.f32 0.5, %v438_v11 }
 0x161   :  { %v492_v15 = vmul.f32 0.5, %v773_v12 }
 0x162   :  { %774 = vtanh.f32 %v461_v13 }
 0x163   :  { %v508_v16 = vadd.f32 0.5, %v492_v15 }
 0x165   :  { %v327_v17 = vpop.f32.mrf.mxu0  ;;  %578 = vmatmul.f32.vlgmr.msra.gmra.mxu3 %v508_v16  ;;  %v443_v22 = vpop.f32.mrf.mxu1 }
 0x166   :  { %v441_v18 = vadd.f32 %v440_v14, %v327_v17 }
 0x168   :  { %v775_v19 = vpop.eup %774  ;;  %v462_v20 = vmul.f32 0.5, %v441_v18 }
 0x169   :  { %v493_v21 = vmul.f32 0.5, %v775_v19 }
 0x16a   :  { %776 = vtanh.f32 %v462_v20 }
 0x16b   :  { %v509_v23 = vadd.f32 0.5, %v493_v21 }
 0x16d   :  { %v330_v24 = vpop.f32.mrf.mxu0  ;;  %581 = vmatmul.f32.gmra.mxu3 %v509_v23  ;;  %v446_v30 = vpop.f32.mrf.mxu1 }
 0x16e   :  { %v444_v25 = vadd.f32 %v443_v22, %v330_v24 }
 0x170   :  { %v777_v26 = vpop.eup %776  ;;  %v463_v27 = vmul.f32 0.5, %v444_v25 }
 0x171   :  { %v494_v28 = vmul.f32 0.5, %v777_v26 }
 0x172   :  { %778 = vtanh.f32 %v463_v27 }
 0x173   :  { %v510_v29 = vadd.f32 0.5, %v494_v28 }
 0x175   :  { %v333_v31 = vpop.f32.mrf.mxu0  ;;  %584 = vmatmul.f32.gmra.mxu3 %v510_v29 }
 0x176   :  { %v447_v32 = vadd.f32 %v446_v30, %v333_v31 }
 0x178   :  { %v779_v33 = vpop.eup %778  ;;  %v464_v34 = vmul.f32 0.5, %v447_v32 }
 0x179   :  { %v495_v35 = vmul.f32 0.5, %v779_v33 }
 0x17a   :  { %780 = vtanh.f32 %v464_v34 }
 0x17b   :  { %v511_v36 = vadd.f32 0.5, %v495_v35 }
 0x17d   :  { %587 = vmatmul.f32.gmra.mxu3 %v511_v36 }
 0x180   :  { %v781_v37 = vpop.eup %780 }
 0x181   :  { %v496_v39 = vmul.f32 0.5, %v781_v37 }
 0x183   :  { %v512_v40 = vadd.f32 0.5, %v496_v39 }
 0x185   :  { %590 = vmatmul.f32.gmra.mxu3 %v512_v40 }
 0x190   :  { %v546_v43 = vpop.f32.mrf.mxu2 }
 0x191   :  { %v596_v44 = vadd.f32 %v1108_v42, %v546_v43 }
 0x193   :  { %v612_v45 = vmul.f32 0.5, %v596_v44 }
 0x195   :  { %782 = vtanh.f32 %v612_v45 }
 0x198   :  { %v549_v46 = vpop.f32.mrf.mxu2 }
 0x199   :  { %v597_v47 = vadd.f32 %v1108_v42, %v549_v46 }
 0x19b   :  { %v783_v48 = vpop.eup %782  ;;  %v613_v49 = vmul.f32 0.5, %v597_v47 }
 0x19c   :  { %v644_v50 = vmul.f32 0.5, %v783_v48 }
 0x19d   :  { %784 = vtanh.f32 %v613_v49 }
 0x19e   :  { %v660_v51 = vadd.f32 0.5, %v644_v50 }
 0x1a0   :  { %677 = vst.msk [vmem:[%s1196_s6] sm:$0xff] %vm676_vm0, %v660_v51  ;;  %v552_v52 = vpop.f32.mrf.mxu2 }
 0x1a1   :  { %v598_v53 = vadd.f32 %v1108_v42, %v552_v52 }
 0x1a3   :  { %v785_v54 = vpop.eup %784  ;;  %v614_v55 = vmul.f32 0.5, %v598_v53 }
 0x1a4   :  { %v645_v56 = vmul.f32 0.5, %v785_v54 }
 0x1a5   :  { %786 = vtanh.f32 %v614_v55 }
 0x1a6   :  { %v661_v57 = vadd.f32 0.5, %v645_v56 }
 0x1a8   :  { %678 = vst.msk [vmem:[%s1196_s6 + $0x8] sm:$0xff] %vm676_vm0, %v661_v57  ;;  %v555_v58 = vpop.f32.mrf.mxu2 }
 0x1a9   :  { %v599_v59 = vadd.f32 %v1108_v42, %v555_v58 }
 0x1ab   :  { %v787_v60 = vpop.eup %786  ;;  %v615_v61 = vmul.f32 0.5, %v599_v59 }
 0x1ac   :  { %v646_v62 = vmul.f32 0.5, %v787_v60 }
 0x1ad   :  { %788 = vtanh.f32 %v615_v61 }
 0x1ae   :  { %v662_v63 = vadd.f32 0.5, %v646_v62 }
 0x1b0   :  { %679 = vst.msk [vmem:[%s1196_s6 + $0x10] sm:$0xff] %vm676_vm0, %v662_v63  ;;  %v558_v0 = vpop.f32.mrf.mxu2 }
 0x1b1   :  { %v600_v1 = vadd.f32 %v1108_v42, %v558_v0 }
 0x1b3   :  { %v789_v2 = vpop.eup %788  ;;  %v616_v3 = vmul.f32 0.5, %v600_v1 }
 0x1b4   :  { %v647_v4 = vmul.f32 0.5, %v789_v2 }
 0x1b5   :  { %790 = vtanh.f32 %v616_v3 }
 0x1b6   :  { %v663_v5 = vadd.f32 0.5, %v647_v4 }
 0x1b8   :  { %680 = vst.msk [vmem:[%s1196_s6 + $0x18] sm:$0xff] %vm676_vm0, %v663_v5  ;;  %v561_v6 = vpop.f32.mrf.mxu2 }
 0x1b9   :  { %v601_v38 = vadd.f32 %v1108_v42, %v561_v6 }
 0x1bb   :  { %v791_v7 = vpop.eup %790  ;;  %v617_v41 = vmul.f32 0.5, %v601_v38 }
 0x1bc   :  { %v648_v8 = vmul.f32 0.5, %v791_v7 }
 0x1bd   :  { %792 = vtanh.f32 %v617_v41 }
 0x1be   :  { %v664_v9 = vadd.f32 0.5, %v648_v8 }
 0x1c0   :  { %681 = vst.msk [vmem:[%s1196_s6 + $0x20] sm:$0xff] %vm676_vm0, %v664_v9  ;;  %v564_v10 = vpop.f32.mrf.mxu2 }
 0x1c1   :  { %v602_v11 = vadd.f32 %v1108_v42, %v564_v10 }
 0x1c3   :  { %v793_v12 = vpop.eup %792  ;;  %v618_v13 = vmul.f32 0.5, %v602_v11 }
 0x1c4   :  { %v649_v14 = vmul.f32 0.5, %v793_v12 }
 0x1c5   :  { %794 = vtanh.f32 %v618_v13 }
 0x1c6   :  { %v665_v15 = vadd.f32 0.5, %v649_v14 }
 0x1c8   :  { %682 = vst.msk [vmem:[%s1196_s6 + $0x28] sm:$0xff] %vm676_vm0, %v665_v15  ;;  %v567_v16 = vpop.f32.mrf.mxu2 }
 0x1c9   :  { %v603_v17 = vadd.f32 %v1108_v42, %v567_v16 }
 0x1cb   :  { %v795_v18 = vpop.eup %794  ;;  %v619_v19 = vmul.f32 0.5, %v603_v17 }
 0x1cc   :  { %v650_v20 = vmul.f32 0.5, %v795_v18 }
 0x1cd   :  { %796 = vtanh.f32 %v619_v19 }
 0x1ce   :  { %v666_v21 = vadd.f32 0.5, %v650_v20 }
 0x1d0   :  { %683 = vst.msk [vmem:[%s1196_s6 + $0x30] sm:$0xff] %vm676_vm0, %v666_v21  ;;  %v570_v22 = vpop.f32.mrf.mxu2 }
 0x1d1   :  { %v604_v23 = vadd.f32 %v1108_v42, %v570_v22 }
 0x1d3   :  { %v797_v24 = vpop.eup %796  ;;  %v620_v25 = vmul.f32 0.5, %v604_v23 }
 0x1d4   :  { %v651_v26 = vmul.f32 0.5, %v797_v24 }
 0x1d5   :  { %798 = vtanh.f32 %v620_v25 }
 0x1d6   :  { %v667_v27 = vadd.f32 0.5, %v651_v26 }
 0x1d8   :  { %684 = vst.msk [vmem:[%s1196_s6 + $0x38] sm:$0xff] %vm676_vm0, %v667_v27  ;;  %v573_v28 = vpop.f32.mrf.mxu2 }
 0x1d9   :  { %v605_v29 = vadd.f32 %v1108_v42, %v573_v28 }
 0x1db   :  { %v799_v30 = vpop.eup %798  ;;  %v621_v31 = vmul.f32 0.5, %v605_v29 }
 0x1dc   :  { %v652_v32 = vmul.f32 0.5, %v799_v30 }
 0x1dd   :  { %800 = vtanh.f32 %v621_v31 }
 0x1de   :  { %v668_v33 = vadd.f32 0.5, %v652_v32 }
 0x1e0   :  { %685 = vst.msk [vmem:[%s1196_s6 + $0x40] sm:$0xff] %vm676_vm0, %v668_v33  ;;  %v576_v34 = vpop.f32.mrf.mxu2 }
 0x1e1   :  { %v606_v35 = vadd.f32 %v1108_v42, %v576_v34 }
 0x1e3   :  { %v801_v36 = vpop.eup %800  ;;  %v622_v37 = vmul.f32 0.5, %v606_v35 }
 0x1e4   :  { %v653_v39 = vmul.f32 0.5, %v801_v36 }
 0x1e5   :  { %802 = vtanh.f32 %v622_v37 }
 0x1e6   :  { %v669_v40 = vadd.f32 0.5, %v653_v39 }
 0x1e8   :  { %686 = vst.msk [vmem:[%s1196_s6 + $0x48] sm:$0xff] %vm676_vm0, %v669_v40  ;;  %v579_v43 = vpop.f32.mrf.mxu3 }
 0x1e9   :  { %v607_v44 = vadd.f32 %v1108_v42, %v579_v43 }
 0x1eb   :  { %v803_v45 = vpop.eup %802  ;;  %v623_v46 = vmul.f32 0.5, %v607_v44 }
 0x1ec   :  { %v654_v47 = vmul.f32 0.5, %v803_v45 }
 0x1ed   :  { %804 = vtanh.f32 %v623_v46 }
 0x1ee   :  { %v670_v48 = vadd.f32 0.5, %v654_v47 }
 0x1f0   :  { %687 = vst.msk [vmem:[%s1196_s6 + $0x50] sm:$0xff] %vm676_vm0, %v670_v48  ;;  %v582_v49 = vpop.f32.mrf.mxu3 }
 0x1f1   :  { %v608_v50 = vadd.f32 %v1108_v42, %v582_v49 }
 0x1f3   :  { %v805_v51 = vpop.eup %804  ;;  %v624_v52 = vmul.f32 0.5, %v608_v50 }
 0x1f4   :  { %v655_v53 = vmul.f32 0.5, %v805_v51 }
 0x1f5   :  { %806 = vtanh.f32 %v624_v52 }
 0x1f6   :  { %v671_v54 = vadd.f32 0.5, %v655_v53 }
 0x1f8   :  { %688 = vst.msk [vmem:[%s1196_s6 + $0x58] sm:$0xff] %vm676_vm0, %v671_v54  ;;  %v585_v55 = vpop.f32.mrf.mxu3 }
 0x1f9   :  { %v609_v56 = vadd.f32 %v1108_v42, %v585_v55 }
 0x1fb   :  { %v807_v57 = vpop.eup %806  ;;  %v625_v58 = vmul.f32 0.5, %v609_v56 }
 0x1fc   :  { %v656_v59 = vmul.f32 0.5, %v807_v57 }
 0x1fd   :  { %808 = vtanh.f32 %v625_v58 }
 0x1fe   :  { %v672_v60 = vadd.f32 0.5, %v656_v59 }
 0x200   :  { %689 = vst.msk [vmem:[%s1196_s6 + $0x60] sm:$0xff] %vm676_vm0, %v672_v60  ;;  %v588_v61 = vpop.f32.mrf.mxu3 }
 0x201   :  { %v610_v62 = vadd.f32 %v1108_v42, %v588_v61 }
 0x203   :  { %v809_v63 = vpop.eup %808  ;;  %v626_v0 = vmul.f32 0.5, %v610_v62 }
 0x204   :  { %v657_v1 = vmul.f32 0.5, %v809_v63 }
 0x205   :  { %810 = vtanh.f32 %v626_v0 }
 0x206   :  { %v673_v2 = vadd.f32 0.5, %v657_v1 }
 0x208   :  { %690 = vst.msk [vmem:[%s1196_s6 + $0x68] sm:$0xff] %vm676_vm0, %v673_v2  ;;  %v591_v3 = vpop.f32.mrf.mxu3 }
 0x209   :  { %v611_v4 = vadd.f32 %v1108_v42, %v591_v3 }
 0x20b   :  { %v811_v5 = vpop.eup %810  ;;  %v627_v6 = vmul.f32 0.5, %v611_v4 }
 0x20c   :  { %v658_v38 = vmul.f32 0.5, %v811_v5 }
 0x20d   :  { %812 = vtanh.f32 %v627_v6 }
 0x20e   :  { %v674_v7 = vadd.f32 0.5, %v658_v38 }
 0x210   :  { %691 = vst.msk [vmem:[%s1196_s6 + $0x70] sm:$0xff] %vm676_vm0, %v674_v7 }
 0x213   :  { %v813_v41 = vpop.eup %812 }
 0x214   :  { %v659_v8 = vmul.f32 0.5, %v813_v41 }
 0x216   :  { %v675_v9 = vadd.f32 0.5, %v659_v8 }
 0x218   :  { %692 = vst.msk [vmem:[%s1196_s6 + $0x78] sm:$0xff] %vm676_vm0, %v675_v9 }

</bundles_post_ra>
